<compile_context>
chip_gen: v7x
topology: tpu7x:2x2x1
jax: 0.10.0
libtpu: 0.0.40
codegen_flags: <defaults>
</compile_context>

<pallas_src>
import functools

import jax
import jax.numpy as jnp
from jax.experimental import pallas as pl
from jax.experimental.pallas import tpu as pltpu

LANE = 128


def _round_up(n, m):
    return ((n + m - 1) // m) * m


def _leaky_relu_f32(x, slope=0.1):
    return jnp.where(x >= 0, x, slope * x)


# ----------------------------------------------------------------------------
# Kernel: one batch tile of the whole (fused) MLP.
#   x_ref   : (tb, in_dim)  f32   (cast to bf16 in-kernel)
#   w12_ref : (in_dim, H)   bf16  (fused L1@L2, N padded to 128)
#   wst_ref : (2, H, H)     bf16  (stacked L3, L4, padded to 128x128)
#   bst_ref : (3, H)        f32   (stacked b12, b3, b4)
#   w5_ref  : (H, out_dim)  bf16  (real, unpadded output width)
#   b5_ref  : (1, out_dim)  f32
#   o_ref   : (tb, out_dim) f32
# ----------------------------------------------------------------------------
def mlp_kernel(x_ref, w12_ref, wst_ref, bst_ref, w5_ref, b5_ref, o_ref):
    # bf16 MXU operands, f32 accumulation; elementwise (bias, LeakyReLU) in f32.
    x = x_ref[...].astype(jnp.bfloat16)
    h = jnp.dot(x, w12_ref[...], preferred_element_type=jnp.float32)
    h = _leaky_relu_f32(h + bst_ref[0:1, :])

    h = jnp.dot(h.astype(jnp.bfloat16), wst_ref[0],
                preferred_element_type=jnp.float32)
    h = _leaky_relu_f32(h + bst_ref[1:2, :])

    h = jnp.dot(h.astype(jnp.bfloat16), wst_ref[1],
                preferred_element_type=jnp.float32)
    h = _leaky_relu_f32(h + bst_ref[2:3, :])

    # NOTE: if tb >= 1024 ever shows f32 spills of the (tb, 128) intermediates
    # in the bundle dump, sub-block this body with lax.fori_loop(unroll=True)
    # over 128-256 row chunks.  Not needed at current sizes.
    out = jnp.dot(h.astype(jnp.bfloat16), w5_ref[...],
                  preferred_element_type=jnp.float32) + b5_ref[...]
    o_ref[...] = out.astype(o_ref.dtype)


# ----------------------------------------------------------------------------
# Parameter preparation: fuse L1*L2, pad hidden features to 128 lanes, keep the
# input K and output N dims real (unpadded), stack resident params, cast to bf16.
# ----------------------------------------------------------------------------
def prepare_kernel_params(params):
    w12 = params["w1"] @ params["w2"]                     # (in_dim, 2*hidden)
    b12 = params["b1"] @ params["w2"] + params["b2"]      # (1, 2*hidden)

    hid2 = w12.shape[1]                # 2*hidden
    hid = params["w4"].shape[1]        # hidden
    H = _round_up(hid2, LANE)          # padded hidden width (128)

    # w12: keep K = in_dim (full-dim block); pad only the output features.
    w12p = jnp.pad(w12, ((0, 0), (0, H - hid2))).astype(jnp.bfloat16)
    b12p = jnp.pad(b12, ((0, 0), (0, H - hid2))).astype(jnp.float32)

    w3p = jnp.pad(params["w3"], ((0, H - hid2), (0, H - hid2))).astype(jnp.bfloat16)
    b3p = jnp.pad(params["b3"], ((0, 0), (0, H - hid2))).astype(jnp.float32)

    w4p = jnp.pad(params["w4"], ((0, H - hid2), (0, H - hid))).astype(jnp.bfloat16)
    b4p = jnp.pad(params["b4"], ((0, 0), (0, H - hid))).astype(jnp.float32)

    # w5: pad only K (rows); keep the real output width so the store is narrow.
    w5p = jnp.pad(params["w5"], ((0, H - hid), (0, 0))).astype(jnp.bfloat16)
    b5p = params["b5"].astype(jnp.float32)

    return dict(
        w12=w12p,                                   # (in_dim, H) bf16
        w_stack=jnp.stack([w3p, w4p]),              # (2, H, H)   bf16
        b_stack=jnp.concatenate([b12p, b3p, b4p]),  # (3, H)      f32
        w5=w5p,                                     # (H, out)    bf16
        b5=b5p,                                     # (1, out)    f32
    )


# ----------------------------------------------------------------------------
# Wrapper: batch-tiled pallas_call, raw f32 input, real-width f32 output.
# ----------------------------------------------------------------------------
def simple_nn_forward(x, kp, tb=2048):
    """x: (batch, input_dim) f32.  kp: output of prepare_kernel_params."""
    batch, in_dim = x.shape
    out_dim = kp["w5"].shape[1]

    # Batch tile: 16-sublane aligned (bf16 packs 16 rows/vreg), capped so the
    # grid has >= 2 steps when batch allows (lets v7x shard across both TCs).
    tb = min(tb, max(16, _round_up(pl.cdiv(batch, 2), 16)))
    grid = (pl.cdiv(batch, tb),)       # ragged last block handled by Pallas

    in_specs = [
        pl.BlockSpec((tb, in_dim), lambda i: (i, 0)),        # streamed activations
        pl.BlockSpec(kp["w12"].shape, lambda i: (0, 0)),      # resident params ...
        pl.BlockSpec(kp["w_stack"].shape, lambda i: (0, 0, 0)),
        pl.BlockSpec(kp["b_stack"].shape, lambda i: (0, 0)),
        pl.BlockSpec(kp["w5"].shape, lambda i: (0, 0)),
        pl.BlockSpec(kp["b5"].shape, lambda i: (0, 0)),
    ]
    out_spec = pl.BlockSpec((tb, out_dim), lambda i: (i, 0))

    return pl.pallas_call(
        mlp_kernel,
        out_shape=jax.ShapeDtypeStruct((batch, out_dim), jnp.float32),
        grid=grid,
        in_specs=in_specs,
        out_specs=out_spec,
        compiler_params=pltpu.CompilerParams(
            dimension_semantics=("parallel",)),   # megacore batch sharding (v7x)
    )(x, kp["w12"], kp["w_stack"], kp["b_stack"], kp["w5"], kp["b5"])


# ----------------------------------------------------------------------------
# Init + references
# ----------------------------------------------------------------------------
def init_params(key, input_dim, output_dim, hidden):
    """nn.Linear-like init (uniform +-1/sqrt(fan_in)), weights stored (in, out)."""
    dims = [
        ("1", input_dim, hidden),
        ("2", hidden, hidden * 2),
        ("3", hidden * 2, hidden * 2),
        ("4", hidden * 2, hidden),
        ("5", hidden, output_dim),
    ]
    params = {}
    for name, fan_in, fan_out in dims:
        key, kw, kb = jax.random.split(key, 3)
        bound = 1.0 / jnp.sqrt(jnp.float32(fan_in))
        params[f"w{name}"] = jax.random.uniform(
            kw, (fan_in, fan_out), jnp.float32, -bound, bound)
        params[f"b{name}"] = jax.random.uniform(
            kb, (1, fan_out), jnp.float32, -bound, bound)
    return params


def reference_forward(x, params):
    """Exact f32 reproduction of the PyTorch forward (unfused, unpadded)."""
    lrelu = lambda v: jnp.where(v >= 0, v, 0.1 * v)
    h = x @ params["w1"] + params["b1"]
    h = h @ params["w2"] + params["b2"]
    h = lrelu(h)
    h = h @ params["w3"] + params["b3"]
    h = lrelu(h)
    h = h @ params["w4"] + params["b4"]
    h = lrelu(h)
    return h @ params["w5"] + params["b5"]


def kernel_arith_reference(x, kp):
    """Pure-JAX path using the identical bf16-operand / f32-accumulate math."""
    lrelu = lambda v: jnp.where(v >= 0, v, 0.1 * v)
    h = jnp.dot(x.astype(jnp.bfloat16), kp["w12"],
                preferred_element_type=jnp.float32) + kp["b_stack"][0:1]
    h = lrelu(h)
    h = jnp.dot(h.astype(jnp.bfloat16), kp["w_stack"][0],
                preferred_element_type=jnp.float32) + kp["b_stack"][1:2]
    h = lrelu(h)
    h = jnp.dot(h.astype(jnp.bfloat16), kp["w_stack"][1],
                preferred_element_type=jnp.float32) + kp["b_stack"][2:3]
    h = lrelu(h)
    return jnp.dot(h.astype(jnp.bfloat16), kp["w5"],
                   preferred_element_type=jnp.float32) + kp["b5"]


if __name__ == "__main__":
    INPUT, OUTPUT, HIDDEN = 32, 16, 32
    BATCH = 8   # NOTE: at this size the call is launch-overhead bound; the
                # batch-tiled grid pays off at realistic batches (1K+ rows).

    key = jax.random.PRNGKey(0)
    key, kx = jax.random.split(key)
    x = jax.random.normal(kx, (BATCH, INPUT), jnp.float32)
    params = init_params(key, INPUT, OUTPUT, HIDDEN)
    kp = prepare_kernel_params(params)

    fwd = jax.jit(functools.partial(simple_nn_forward, tb=2048))
    out = jax.block_until_ready(fwd(x, kp))
    assert out.shape == (BATCH, OUTPUT)

    # Tight check vs. a pure-JAX path with the identical bf16/f32 arithmetic.
    ref_same = kernel_arith_reference(x, kp)
    assert jnp.allclose(out, ref_same, atol=2e-3, rtol=2e-3), "mismatch vs bf16 reference"

    # Loose check vs. the exact f32 PyTorch-equivalent forward (bf16 rounding).
    ref_f32 = reference_forward(x, params)
    assert jnp.allclose(out, ref_f32, atol=8e-2, rtol=8e-2), "mismatch vs f32 reference"

    print("KERNEL_OK")
</pallas_src>

<mosaic_0001>
module attributes {stable_mosaic.version = 11 : i64} {
  func.func @mlp_kernel(%arg0: i32, %arg1: memref<16x32xf32, #tpu.memory_space<vmem>>, %arg2: memref<32x128xbf16, #tpu.memory_space<vmem>>, %arg3: memref<2x128x128xbf16, #tpu.memory_space<vmem>>, %arg4: memref<3x128xf32, #tpu.memory_space<vmem>>, %arg5: memref<128x16xbf16, #tpu.memory_space<vmem>>, %arg6: memref<1x16xf32, #tpu.memory_space<vmem>>, %arg7: memref<16x16xf32, #tpu.memory_space<vmem>>) attributes {dimension_semantics = [#tpu.dimension_semantics<parallel>], iteration_bounds = array<i64: 1>, scalar_prefetch = 0 : i64, scratch_operands = 0 : i64, tpu.core_type = #tpu.core_type<tc>, window_params = [{transform_indices = @transform_0, window_bounds = array<i64: 16, 32>}, {pipeline_mode = #tpu.pipeline_mode<synchronous>, transform_indices = @transform_1, window_bounds = array<i64: 32, 128>}, {pipeline_mode = #tpu.pipeline_mode<synchronous>, transform_indices = @transform_2, window_bounds = array<i64: 2, 128, 128>}, {pipeline_mode = #tpu.pipeline_mode<synchronous>, transform_indices = @transform_3, window_bounds = array<i64: 3, 128>}, {pipeline_mode = #tpu.pipeline_mode<synchronous>, transform_indices = @transform_4, window_bounds = array<i64: 128, 16>}, {pipeline_mode = #tpu.pipeline_mode<synchronous>, transform_indices = @transform_5, window_bounds = array<i64: 1, 16>}, {transform_indices = @transform_6, window_bounds = array<i64: 16, 16>}]} {
    %c0 = arith.constant 0 : index
    %c0_0 = arith.constant 0 : index
    %0 = vector.load %arg1[%c0, %c0_0] : memref<16x32xf32, #tpu.memory_space<vmem>>, vector<16x32xf32>
    %1 = arith.truncf %0 : vector<16x32xf32> to vector<16x32xbf16>
    %c0_1 = arith.constant 0 : index
    %c0_2 = arith.constant 0 : index
    %2 = vector.load %arg2[%c0_1, %c0_2] : memref<32x128xbf16, #tpu.memory_space<vmem>>, vector<32x128xbf16>
    %cst = arith.constant dense<0.000000e+00> : vector<16x128xf32>
    %3 = tpu.matmul %1, %2, %cst {dimension_numbers = #tpu.dot_dimension_numbers<[1], [0], [0], [1], [0, 0, 1, 1], [], []>} : vector<16x32xbf16>, vector<32x128xbf16>, vector<16x128xf32> -> vector<16x128xf32>
    %c0_3 = arith.constant 0 : index
    %c0_4 = arith.constant 0 : index
    %4 = vector.load %arg4[%c0_3, %c0_4] : memref<3x128xf32, #tpu.memory_space<vmem>>, vector<1x128xf32>
    %5 = vector.broadcast %4 : vector<1x128xf32> to vector<16x128xf32>
    %6 = arith.addf %3, %5 : vector<16x128xf32>
    %cst_5 = arith.constant 0.000000e+00 : f32
    %7 = vector.broadcast %cst_5 : f32 to vector<16x128xf32>
    %8 = arith.cmpf oge, %6, %7 : vector<16x128xf32>
    %cst_6 = arith.constant 1.000000e-01 : f32
    %9 = vector.broadcast %cst_6 : f32 to vector<16x128xf32>
    %10 = arith.mulf %9, %6 : vector<16x128xf32>
    %11 = arith.select %8, %6, %10 : vector<16x128xi1>, vector<16x128xf32>
    %12 = arith.truncf %11 : vector<16x128xf32> to vector<16x128xbf16>
    %c0_7 = arith.constant 0 : index
    %c0_8 = arith.constant 0 : index
    %c0_9 = arith.constant 0 : index
    %13 = vector.load %arg3[%c0_7, %c0_8, %c0_9] : memref<2x128x128xbf16, #tpu.memory_space<vmem>>, vector<1x128x128xbf16>
    %14 = vector.shape_cast %13 : vector<1x128x128xbf16> to vector<128x128xbf16>
    %cst_10 = arith.constant dense<0.000000e+00> : vector<16x128xf32>
    %15 = tpu.matmul %12, %14, %cst_10 {dimension_numbers = #tpu.dot_dimension_numbers<[1], [0], [0], [1], [0, 0, 1, 1], [], []>} : vector<16x128xbf16>, vector<128x128xbf16>, vector<16x128xf32> -> vector<16x128xf32>
    %c1 = arith.constant 1 : index
    %c0_11 = arith.constant 0 : index
    %16 = vector.load %arg4[%c1, %c0_11] : memref<3x128xf32, #tpu.memory_space<vmem>>, vector<1x128xf32>
    %17 = vector.broadcast %16 : vector<1x128xf32> to vector<16x128xf32>
    %18 = arith.addf %15, %17 : vector<16x128xf32>
    %cst_12 = arith.constant 0.000000e+00 : f32
    %19 = vector.broadcast %cst_12 : f32 to vector<16x128xf32>
    %20 = arith.cmpf oge, %18, %19 : vector<16x128xf32>
    %cst_13 = arith.constant 1.000000e-01 : f32
    %21 = vector.broadcast %cst_13 : f32 to vector<16x128xf32>
    %22 = arith.mulf %21, %18 : vector<16x128xf32>
    %23 = arith.select %20, %18, %22 : vector<16x128xi1>, vector<16x128xf32>
    %24 = arith.truncf %23 : vector<16x128xf32> to vector<16x128xbf16>
    %c1_14 = arith.constant 1 : index
    %c0_15 = arith.constant 0 : index
    %c0_16 = arith.constant 0 : index
    %25 = vector.load %arg3[%c1_14, %c0_15, %c0_16] : memref<2x128x128xbf16, #tpu.memory_space<vmem>>, vector<1x128x128xbf16>
    %26 = vector.shape_cast %25 : vector<1x128x128xbf16> to vector<128x128xbf16>
    %cst_17 = arith.constant dense<0.000000e+00> : vector<16x128xf32>
    %27 = tpu.matmul %24, %26, %cst_17 {dimension_numbers = #tpu.dot_dimension_numbers<[1], [0], [0], [1], [0, 0, 1, 1], [], []>} : vector<16x128xbf16>, vector<128x128xbf16>, vector<16x128xf32> -> vector<16x128xf32>
    %c2 = arith.constant 2 : index
    %c0_18 = arith.constant 0 : index
    %28 = vector.load %arg4[%c2, %c0_18] : memref<3x128xf32, #tpu.memory_space<vmem>>, vector<1x128xf32>
    %29 = vector.broadcast %28 : vector<1x128xf32> to vector<16x128xf32>
    %30 = arith.addf %27, %29 : vector<16x128xf32>
    %cst_19 = arith.constant 0.000000e+00 : f32
    %31 = vector.broadcast %cst_19 : f32 to vector<16x128xf32>
    %32 = arith.cmpf oge, %30, %31 : vector<16x128xf32>
    %cst_20 = arith.constant 1.000000e-01 : f32
    %33 = vector.broadcast %cst_20 : f32 to vector<16x128xf32>
    %34 = arith.mulf %33, %30 : vector<16x128xf32>
    %35 = arith.select %32, %30, %34 : vector<16x128xi1>, vector<16x128xf32>
    %36 = arith.truncf %35 : vector<16x128xf32> to vector<16x128xbf16>
    %c0_21 = arith.constant 0 : index
    %c0_22 = arith.constant 0 : index
    %37 = vector.load %arg5[%c0_21, %c0_22] : memref<128x16xbf16, #tpu.memory_space<vmem>>, vector<128x16xbf16>
    %cst_23 = arith.constant dense<0.000000e+00> : vector<16x16xf32>
    %38 = tpu.matmul %36, %37, %cst_23 {dimension_numbers = #tpu.dot_dimension_numbers<[1], [0], [0], [1], [0, 0, 1, 1], [], []>} : vector<16x128xbf16>, vector<128x16xbf16>, vector<16x16xf32> -> vector<16x16xf32>
    %c0_24 = arith.constant 0 : index
    %c0_25 = arith.constant 0 : index
    %39 = vector.load %arg6[%c0_24, %c0_25] : memref<1x16xf32, #tpu.memory_space<vmem>>, vector<1x16xf32>
    %40 = vector.broadcast %39 : vector<1x16xf32> to vector<16x16xf32>
    %41 = arith.addf %38, %40 : vector<16x16xf32>
    %c0_26 = arith.constant 0 : index
    %c0_27 = arith.constant 0 : index
    %42 = vector.load %arg7[%c0_26, %c0_27] : memref<16x16xf32, #tpu.memory_space<vmem>>, vector<16x16xf32>
    tpu.vector_store %arg7[%c0_26, %c0_27], %41 {strides = array<i32>} : memref<16x16xf32, #tpu.memory_space<vmem>>, vector<16x16xf32>,
    return
  }
  func.func @transform_0(%arg0: i32) -> (i32, i32) {
    %c0_i32 = arith.constant 0 : i32
    %c0_i32_0 = arith.constant 0 : i32
    return %arg0, %c0_i32 : i32, i32
  }
  func.func @transform_1(%arg0: i32) -> (i32, i32) {
    %c0_i32 = arith.constant 0 : i32
    %c0_i32_0 = arith.constant 0 : i32
    %c0_i32_1 = arith.constant 0 : i32
    return %c0_i32, %c0_i32_0 : i32, i32
  }
  func.func @transform_2(%arg0: i32) -> (i32, i32, i32) {
    %c0_i32 = arith.constant 0 : i32
    %c0_i32_0 = arith.constant 0 : i32
    %c0_i32_1 = arith.constant 0 : i32
    %c0_i32_2 = arith.constant 0 : i32
    return %c0_i32, %c0_i32_0, %c0_i32_1 : i32, i32, i32
  }
  func.func @transform_3(%arg0: i32) -> (i32, i32) {
    %c0_i32 = arith.constant 0 : i32
    %c0_i32_0 = arith.constant 0 : i32
    %c0_i32_1 = arith.constant 0 : i32
    return %c0_i32, %c0_i32_0 : i32, i32
  }
  func.func @transform_4(%arg0: i32) -> (i32, i32) {
    %c0_i32 = arith.constant 0 : i32
    %c0_i32_0 = arith.constant 0 : i32
    %c0_i32_1 = arith.constant 0 : i32
    return %c0_i32, %c0_i32_0 : i32, i32
  }
  func.func @transform_5(%arg0: i32) -> (i32, i32) {
    %c0_i32 = arith.constant 0 : i32
    %c0_i32_0 = arith.constant 0 : i32
    %c0_i32_1 = arith.constant 0 : i32
    return %c0_i32, %c0_i32_0 : i32, i32
  }
  func.func @transform_6(%arg0: i32) -> (i32, i32) {
    %c0_i32 = arith.constant 0 : i32
    %c0_i32_0 = arith.constant 0 : i32
    return %arg0, %c0_i32 : i32, i32
  }
}

</mosaic_0001>

<bundles_post_ra>
// kernel: simple_nn_forward.1
= control target key start
LH: loop header
LB: loop body
LE: loop exit
PB: predicated region body
PF: predicated region fallthrough
CT: control target
= control target key end

     0   :  { %11 = vsyncpa [#allocation3], 0  ;;  %s842_s0 = inlined_call_operand.vmem [shape: f32[8,32], index: 0, kind: input, shape index: {}]   ;;  %s843_s1 = inlined_call_operand.vmem [shape: bf16[32,128], index: 1, kind: input, shape index: {}]   ;;  %s844_s2 = inlined_call_operand.hbm [shape: bf16[2,128,128], index: 2, kind: input, shape index: {}]   ;;  %s845_s3 = inlined_call_operand.vmem [shape: f32[3,128], index: 3, kind: input, shape index: {}]   ;;  %s846_s4 = inlined_call_operand.vmem [shape: bf16[128,16], index: 4, kind: input, shape index: {}]   ;;  %s847_s5 = inlined_call_operand.vmem [shape: f32[1,16], index: 5, kind: input, shape index: {}]   ;;  %s848_s6 = inlined_call_operand.hbm [shape: f32[8,16], index: 6, kind: output, shape index: {}]  }
   0x1   :  { %12 = vsyncpa [#allocation4], 0  ;;  %s693_s21 = smov [#allocation2]   ;;  %s645_s25 = scalar_lea.hbm %s844_s2, 2048 }
   0x2   :  { %s22_s22 = sshll.u32 %s693_s21, 4  ;;  %p646_p0 = scmp.ne.s32.totalorder %s844_s2, %s645_s25  ;;  %s23_s22 = int_to_ptr.vmem [resolvable:$true] %s22_s22 }
   0x3   :  { %p649_p1 = scmp.lt.u32.totalorder %s645_s25, %s844_s2 }
   0x5   :  { %p651_p2 = pnand %p649_p1, %p646_p0 }
   0x7   :  { %654 = shalt.err (!%p651_p2)
}
   0x8   :  { %s655_s30 = scalar_lea.vmem %s23_s22, 2048  ;;  %p660_p4 = scmp.lt.s32.totalorder %s23_s22, %s23_s22 }
   0x9   :  { %p656_p3 = scmp.ne.s32.totalorder %s23_s22, %s655_s30  ;;  %p661_p5 = scmp.lt.s32.totalorder %s655_s30, %s655_s30 }
   0xb   :  { %p662_p6 = por %p661_p5, %p660_p4 }
   0xd   :  { %p663_p7 = pnand %p662_p6, %p656_p3 }
   0xf   :  { %666 = shalt.err (!%p663_p7)
}
  0x10   :  { %s694_s7 = smov 64   ;;  %s695_s8 = smov 4  }
  0x11   :  { %28 = dma.hbm_to_vmem [thread:$0]  %s844_s2, 2048, %s23_s22, [#allocation3], %s694_s7, %s694_s7, %s695_s8  }
  0x12   :  { %689 = dma.done.wait [#allocation3], 2048  }
  0x13   :  { %690 = vsyncadd [#allocation3], 4294965248  ;;  %v696_v0 = vmov 0.0   ;;  %vm697_vm0 = vmmov 0   ;;  %v619_v1 = vld [vmem:[%s843_s1] sm:$0xff]   ;;  %v620_v2 = vld [vmem:[%s843_s1 + $0x8] sm:$0xff]  }
  0x14   :  { %543 = vmatprep.subr.bf16.mxu0 %v696_v0  ;;  %547 = vmatprep.mubr.msk.bf16.mxu0 %vm697_vm0, %v696_v0  ;;  %v39_v3 = vld [vmem:[%s842_s0] sm:$0xff]  ;;  %v40_v4 = vld [vmem:[%s842_s0 + $0x8] sm:$0xff]  ;;  %vm63_vm1 = vcmask 261120   ;;  %v623_v8 = vld [vmem:[#allocation2 + $0x10] sm:$0xff]   ;;  %vm462_vm8 = vcmask 130048  }
  0x15   :  { %551 = vmatprep.subr.bf16.mxu1 %v696_v0  ;;  %567 = vmatprep.mubr.msk.bf16.mxu1 %vm697_vm0, %v696_v0  ;;  %v621_v5 = vld [vmem:[#allocation2] sm:$0xff]   ;;  %v41_v6 = vpack.c.bf16 %v40_v4, %v39_v3  ;;  %v622_v7 = vld [vmem:[#allocation2 + $0x8] sm:$0xff]   ;;  %v624_v9 = vld [vmem:[#allocation2 + $0x18] sm:$0xff]  }
  0x16   :  { %544 = vmatpush3.bf16.msra.mxu0 %v619_v1  ;;  %552 = vmatpush3.bf16.msra.mxu1 %v621_v5  ;;  %v625_v10 = vld [vmem:[#allocation2 + $0x20] sm:$0xff]   ;;  %v626_v11 = vld [vmem:[#allocation2 + $0x28] sm:$0xff]   ;;  %v627_v12 = vld [vmem:[#allocation2 + $0x30] sm:$0xff]  }
  0x17   :  { %545 = vmatprep.subr.bf16.mxu0 %v696_v0  ;;  %553 = vmatprep.subr.bf16.mxu1 %v696_v0  ;;  %v628_v13 = vld [vmem:[#allocation2 + $0x38] sm:$0xff]   ;;  %v629_v14 = vld [vmem:[#allocation2 + $0x40] sm:$0xff]   ;;  %v630_v15 = vld [vmem:[#allocation2 + $0x48] sm:$0xff]  }
  0x18   :  { %v631_v16 = vld [vmem:[#allocation2 + $0x50] sm:$0xff]   ;;  %v632_v17 = vld [vmem:[#allocation2 + $0x58] sm:$0xff]   ;;  %v633_v18 = vld [vmem:[#allocation2 + $0x60] sm:$0xff]  }
  0x19   :  { %v634_v19 = vld [vmem:[#allocation2 + $0x68] sm:$0xff]   ;;  %v482_v20 = vld [vmem:[%s845_s3] ss:$0 sm:$0xff]  ;;  %v635_v32 = vld [vmem:[#allocation2 + $0x70] sm:$0xff]  }
  0x1a   :  { %546 = vmatpush3.bf16.msra.mxu0 %v620_v2  ;;  %554 = vmatpush3.bf16.msra.mxu1 %v622_v7  ;;  %v636_v33 = vld [vmem:[#allocation2 + $0x78] sm:$0xff]   ;;  %v637_v34 = vld [vmem:[%s846_s4] sm:$0xff]   ;;  %v638_v35 = vld [vmem:[%s846_s4 + $0x8] sm:$0xff]  }
  0x1b   :  { %571 = vmatprep.subr.bf16.mxu0 %v696_v0  ;;  %555 = vmatprep.subr.bf16.mxu1 %v696_v0  ;;  %v639_v36 = vld [vmem:[%s846_s4 + $0x10] sm:$0xff]   ;;  %v640_v37 = vld [vmem:[%s846_s4 + $0x18] sm:$0xff]   ;;  %v641_v38 = vld [vmem:[%s846_s4 + $0x20] sm:$0xff]  }
  0x1c   :  { %v642_v39 = vld [vmem:[%s846_s4 + $0x28] sm:$0xff]   ;;  %v486_v40 = vld [vmem:[%s845_s3 + $0x1] ss:$0 sm:$0xff]  ;;  %v643_v52 = vld [vmem:[%s846_s4 + $0x30] sm:$0xff]  }
  0x1d   :  { %548 = vmatmul.mubr.msk.bf16.vlgmr.msra.gmra.mrb[0].mxu0 %vm63_vm1, %v41_v6  ;;  %v644_v53 = vld [vmem:[%s846_s4 + $0x38] sm:$0xff]   ;;  %v495_v54 = vld [vmem:[%s845_s3 + $0x2] ss:$0 sm:$0xff]  ;;  %v504_v2 = vld [vmem:[%s847_s5] ss:$0 sm:$0xff] }
  0x1e   :  { %587 = vmatprep.mubr.msk.bf16.mxu0 %vm697_vm0, %v696_v0  ;;  %556 = vmatpush3.bf16.msra.mxu1 %v623_v8 }
  0x1f   :  { %557 = vmatprep.subr.bf16.mxu1 %v696_v0  ;;  %572 = vmatpush3.bf16.msra.mxu0 %v629_v14 }
  0x20   :  { %573 = vmatprep.subr.bf16.mxu0 %v696_v0 }
  0x22   :  { %558 = vmatpush3.bf16.msra.mxu1 %v624_v9 }
  0x23   :  { %559 = vmatprep.subr.bf16.mxu1 %v696_v0  ;;  %574 = vmatpush3.bf16.msra.mxu0 %v630_v15 }
  0x24   :  { %575 = vmatprep.subr.bf16.mxu0 %v696_v0 }
  0x26   :  { %560 = vmatpush3.bf16.msra.mxu1 %v625_v10 }
  0x27   :  { %561 = vmatprep.subr.bf16.mxu1 %v696_v0  ;;  %576 = vmatpush3.bf16.msra.mxu0 %v631_v16 }
  0x28   :  { %577 = vmatprep.subr.bf16.mxu0 %v696_v0 }
  0x2a   :  { %562 = vmatpush3.bf16.msra.mxu1 %v626_v11 }
  0x2b   :  { %563 = vmatprep.subr.bf16.mxu1 %v696_v0  ;;  %578 = vmatpush3.bf16.msra.mxu0 %v632_v17 }
  0x2c   :  { %579 = vmatprep.subr.bf16.mxu0 %v696_v0 }
  0x2e   :  { %564 = vmatpush3.bf16.msra.mxu1 %v627_v12 }
  0x2f   :  { %565 = vmatprep.subr.bf16.mxu1 %v696_v0  ;;  %580 = vmatpush3.bf16.msra.mxu0 %v633_v18 }
  0x30   :  { %581 = vmatprep.subr.bf16.mxu0 %v696_v0 }
  0x32   :  { %566 = vmatpush3.bf16.msra.mxu1 %v628_v13 }
  0x33   :  { %591 = vmatprep.subr.bf16.mxu1 %v696_v0  ;;  %582 = vmatpush3.bf16.msra.mxu0 %v634_v19 }
  0x34   :  { %583 = vmatprep.subr.bf16.mxu0 %v696_v0 }
  0x37   :  { %584 = vmatpush3.bf16.msra.mxu0 %v635_v32 }
  0x38   :  { %585 = vmatprep.subr.bf16.mxu0 %v696_v0 }
  0x3b   :  { %586 = vmatpush3.bf16.msra.mxu0 %v636_v33 }
  0xf0   :  { %v101_v21 = vpop.f32.mrb[0].mxu0 }
  0xf1   :  { %v102_v22 = vadd.f32 %v482_v20, %v101_v21  ;;  %v549_v23 = vpop.f32.mrb[1].mxu0 }
  0xf2   :  { %v104_v24 = vpop.f32.mrb[2].mxu0 }
  0xf3   :  { %v110_v25 = vmul.f32 0.1, %v102_v22  ;;  %v105_v26 = vadd.f32 %v482_v20, %v104_v24  ;;  %v550_v27 = vpop.f32.mrb[3].mxu0  ;;  %vm108_vm2 = vcmp.ge.f32.partialorder %v102_v22, 0.0 }
  0xf5   :  { %vm109_vm3 = vcmp.ge.f32.partialorder %v105_v26, 0.0  ;;  %v111_v28 = vmul.f32 0.1, %v105_v26  ;;  %v112_v29 = vsel %vm108_vm2, %v102_v22, %v110_v25 }
  0xf7   :  { %v113_v30 = vsel %vm109_vm3, %v105_v26, %v111_v28 }
  0xf8   :  { %v114_v31 = vpack.c.bf16 %v113_v30, %v112_v29 }
  0xfa   :  { %568 = vmatmul.mubr.bf16.vlgmr.msra.gmra.mrb[0].mxu1 %v114_v31 }
  0xfb   :  { %607 = vmatprep.mubr.msk.bf16.mxu1 %vm697_vm0, %v696_v0  ;;  %592 = vmatpush3.bf16.msra.mxu1 %v637_v34 }
  0xfc   :  { %593 = vmatprep.subr.bf16.mxu1 %v696_v0 }
  0xff   :  { %594 = vmatpush3.bf16.msra.mxu1 %v638_v35 }
 0x100   :  { %595 = vmatprep.subr.bf16.mxu1 %v696_v0 }
 0x103   :  { %596 = vmatpush3.bf16.msra.mxu1 %v639_v36 }
 0x104   :  { %597 = vmatprep.subr.bf16.mxu1 %v696_v0 }
 0x107   :  { %598 = vmatpush3.bf16.msra.mxu1 %v640_v37 }
 0x108   :  { %599 = vmatprep.subr.bf16.mxu1 %v696_v0 }
 0x10b   :  { %600 = vmatpush3.bf16.msra.mxu1 %v641_v38 }
 0x10c   :  { %601 = vmatprep.subr.bf16.mxu1 %v696_v0 }
 0x10f   :  { %602 = vmatpush3.bf16.msra.mxu1 %v642_v39 }
 0x110   :  { %603 = vmatprep.subr.bf16.mxu1 %v696_v0 }
 0x113   :  { %604 = vmatpush3.bf16.msra.mxu1 %v643_v52 }
 0x114   :  { %605 = vmatprep.subr.bf16.mxu1 %v696_v0 }
 0x117   :  { %606 = vmatpush3.bf16.msra.mxu1 %v644_v53 }
 0x1cd   :  { %v218_v41 = vpop.f32.mrb[0].mxu1 }
 0x1ce   :  { %v219_v42 = vadd.f32 %v486_v40, %v218_v41  ;;  %v569_v43 = vpop.f32.mrb[1].mxu1 }
 0x1cf   :  { %v221_v44 = vpop.f32.mrb[2].mxu1 }
 0x1d0   :  { %v227_v45 = vmul.f32 0.1, %v219_v42  ;;  %v222_v46 = vadd.f32 %v486_v40, %v221_v44  ;;  %v570_v47 = vpop.f32.mrb[3].mxu1  ;;  %vm225_vm4 = vcmp.ge.f32.partialorder %v219_v42, 0.0 }
 0x1d2   :  { %vm226_vm5 = vcmp.ge.f32.partialorder %v222_v46, 0.0  ;;  %v228_v48 = vmul.f32 0.1, %v222_v46  ;;  %v229_v49 = vsel %vm225_vm4, %v219_v42, %v227_v45 }
 0x1d4   :  { %v230_v50 = vsel %vm226_vm5, %v222_v46, %v228_v48 }
 0x1d5   :  { %v231_v51 = vpack.c.bf16 %v230_v50, %v229_v49 }
 0x1d7   :  { %588 = vmatmul.mubr.bf16.vlgmr.msra.gmra.mrb[4].mxu0 %v231_v51 }
 0x2aa   :  { %v336_v55 = vpop.f32.mrb[4].mxu0 }
 0x2ab   :  { %v337_v56 = vadd.f32 %v495_v54, %v336_v55  ;;  %v589_v57 = vpop.f32.mrb[5].mxu0 }
 0x2ac   :  { %v339_v58 = vpop.f32.mrb[6].mxu0 }
 0x2ad   :  { %v345_v59 = vmul.f32 0.1, %v337_v56  ;;  %v340_v60 = vadd.f32 %v495_v54, %v339_v58  ;;  %v590_v61 = vpop.f32.mrb[7].mxu0  ;;  %vm343_vm6 = vcmp.ge.f32.partialorder %v337_v56, 0.0 }
 0x2af   :  { %vm344_vm7 = vcmp.ge.f32.partialorder %v340_v60, 0.0  ;;  %v346_v62 = vmul.f32 0.1, %v340_v60  ;;  %v347_v63 = vsel %vm343_vm6, %v337_v56, %v345_v59 }
 0x2b1   :  { %v348_v0 = vsel %vm344_vm7, %v340_v60, %v346_v62 }
 0x2b2   :  { %v349_v1 = vpack.c.bf16 %v348_v0, %v347_v63 }
 0x2b4   :  { %608 = vmatmul.mubr.bf16.vlgmr.msra.gmra.mrb[4].mxu1 %v349_v1 }
 0x387   :  { %v455_v3 = vpop.f32.mrb[4].mxu1 }
 0x388   :  { %v456_v4 = vadd.f32 %v504_v2, %v455_v3  ;;  %v609_v5 = vpop.f32.mrb[5].mxu1 }
 0x389   :  { %v458_v6 = vpop.f32.mrb[6].mxu1 }
 0x38a   :  { %463 = vst.msk [vmem:[#allocation5] sm:$0xff] %vm462_vm8, %v456_v4  ;;  %v459_v7 = vadd.f32 %v504_v2, %v458_v6  ;;  %v610_v8 = vpop.f32.mrb[7].mxu1 }
 0x38c   :  { %464 = vst.msk [vmem:[#allocation5 + $0x8] sm:$0xff] %vm462_vm8, %v459_v7 }
 0x38d   :  { %469 = vsyncadd [#allocation4], 128  ;;  %s698_s3 = smov [#allocation5]  }
 0x38e   :  { %s470_s14 = sshll.u32 %s698_s3, 4  ;;  %s471_s14 = int_to_ptr.vmem [resolvable:$true] %s470_s14 }
 0x38f   :  { %s667_s15 = scalar_lea.vmem %s471_s14, 128  ;;  %s671_s16 = scalar_lea.vmem %s471_s14, 256 }
 0x390   :  { %p668_p8 = scmp.ne.s32.totalorder %s471_s14, %s667_s15  ;;  %p672_p9 = scmp.lt.s32.totalorder %s471_s14, %s471_s14 }
 0x391   :  { %p673_p10 = scmp.lt.s32.totalorder %s671_s16, %s667_s15 }
 0x393   :  { %p674_p11 = por %p673_p10, %p672_p9 }
 0x395   :  { %p675_p12 = pnand %p674_p11, %p668_p8 }
 0x397   :  { %678 = shalt.err (!%p675_p12)
}
 0x398   :  { %s679_s0 = scalar_lea.hbm %s848_s6, 128 }
 0x399   :  { %p680_p13 = scmp.ne.s32.totalorder %s848_s6, %s679_s0  ;;  %p683_p0 = scmp.lt.u32.totalorder %s679_s0, %s848_s6 }
 0x39b   :  { %p685_p1 = pnand %p683_p0, %p680_p13 }
 0x39d   :  { %688 = shalt.err (!%p685_p1)
}
 0x39e   :  { %s699_s21 = smov 128   ;;  %s700_s22 = smov 8  }
 0x39f   :  { %476 = dma.vmem_to_hbm [thread:$0]  %s471_s14, 128, %s848_s6, [#allocation4], %s699_s21, %s699_s21, %s700_s22  }
 0x3a0   :  { %691 = dma.done.wait [#allocation4], 256  }
 0x3a1   :  { %692 = vsyncadd [#allocation4], 4294967040 }
 0x3a2   :  { %480 = vsyncpa [#allocation3], 1 }
 0x3a3   :  { %481 = vsyncpa [#allocation4], 1 }

</bundles_post_ra>
